<compile_context>
chip_gen: v5e
topology: v5e:2x2
jax: 0.10.0
libtpu: 0.0.40
codegen_flags: <defaults>
</compile_context>

<pallas_src>
import functools

import jax
import jax.numpy as jnp
from jax import lax
from jax.experimental import pallas as pl
from jax.experimental.pallas import tpu as pltpu

LANE = 128
MAX_TILE_R = 2048  # 2048 rows * 128 lanes * 4 B = 1 MiB per f32 input block


def _round_up(x, m):
    return ((x + m - 1) // m) * m


def _cdiv(a, b):
    return -(-a // b)


def _row_granularity(dtype):
    """Rows per (8,128) vreg for this dtype (sub-32-bit packs along sublanes)."""
    itemsize = jnp.dtype(dtype).itemsize
    return 8 * max(1, 4 // max(1, itemsize))


def _dice_kernel(x_ref, t_ref, out_ref, *, chunk_rows, n_chunks, tile_r,
                 valid_rows_last, needs_mask):
    """One (tile_r, 128) block -> (1, 2, 8, 128) partials.

    out[0,0,:,:] = per-lane-slot sum of sigmoid(x)*t
    out[0,1,:,:] = per-lane-slot sum of sigmoid(x)+t   (fused denominator)
    """
    i = pl.program_id(0)
    last = pl.num_programs(0) - 1

    if needs_mask:
        # Valid row count for this block: static tile_r everywhere except the
        # last (partial) block.  Shapes are static so no scalar prefetch is
        # needed.  OOB rows of the partial block hold undefined data and are
        # zeroed here before they touch the sums.
        limit = jnp.where(i == last, jnp.int32(valid_rows_last),
                          jnp.int32(tile_r))
        row_iota = lax.broadcasted_iota(jnp.int32, (chunk_rows, LANE), 0)

    zero = jnp.zeros((chunk_rows, LANE), jnp.float32)

    def body(j, carry):
        acc_st, acc_den = carry
        r0 = pl.multiple_of(j * chunk_rows, chunk_rows)
        x = x_ref[pl.ds(r0, chunk_rows), :].astype(jnp.float32)
        t = t_ref[pl.ds(r0, chunk_rows), :].astype(jnp.float32)
        s = jax.nn.sigmoid(x)
        if needs_mask:
            m = (row_iota + j * chunk_rows) < limit
            s = jnp.where(m, s, 0.0)
            t = jnp.where(m, t, 0.0)
        return acc_st + s * t, acc_den + (s + t)

    acc_st, acc_den = lax.fori_loop(0, n_chunks, body, (zero, zero),
                                    unroll=min(8, n_chunks))

    # Fold the (chunk_rows, 128) accumulators down to a single (8, 128) vreg.
    out_ref[0, 0, :, :] = acc_st.reshape(chunk_rows // 8, 8, LANE).sum(axis=0)
    out_ref[0, 1, :, :] = acc_den.reshape(chunk_rows // 8, 8, LANE).sum(axis=0)


def dice_loss(inputs, targets, smooth=0.001):
    """Pallas TPU implementation of DiceLoss.forward (1 - dice)."""
    if inputs.dtype == jnp.bool_:
        inputs = inputs.astype(jnp.float32)
    if targets.dtype == jnp.bool_:
        targets = targets.astype(jnp.float32)

    n = int(inputs.size)
    x = inputs.reshape(-1)
    t = targets.reshape(-1)

    chunk_rows = max(_row_granularity(x.dtype), _row_granularity(t.dtype))

    if n % LANE != 0:
        # Ragged tail: pad only to the next 128-lane boundary with benign
        # values (sigmoid(most-negative) == 0 exactly; target 0), so the
        # padded lanes contribute nothing.  This is the only path that copies
        # the inputs; the common case (n % 128 == 0) is zero-copy.
        pad = LANE - (n % LANE)
        if jnp.issubdtype(x.dtype, jnp.floating):
            neg = jnp.finfo(x.dtype).min
        else:
            neg = jnp.iinfo(x.dtype).min
        x = jnp.pad(x, (0, pad), constant_values=neg)
        t = jnp.pad(t, (0, pad), constant_values=0)

    rows = x.shape[0] // LANE
    x2 = x.reshape(rows, LANE)   # free reshape (row-major bitcast)
    t2 = t.reshape(rows, LANE)

    tile_r = min(MAX_TILE_R, _round_up(rows, chunk_rows))
    num_blocks = _cdiv(rows, tile_r)
    valid_rows_last = rows - (num_blocks - 1) * tile_r
    needs_mask = (rows % tile_r) != 0
    n_chunks = tile_r // chunk_rows

    kernel = functools.partial(
        _dice_kernel, chunk_rows=chunk_rows, n_chunks=n_chunks, tile_r=tile_r,
        valid_rows_last=valid_rows_last, needs_mask=needs_mask)

    partials = pl.pallas_call(
        kernel,
        out_shape=jax.ShapeDtypeStruct((num_blocks, 2, 8, LANE), jnp.float32),
        grid=(num_blocks,),
        in_specs=[
            pl.BlockSpec((tile_r, LANE), lambda i: (i, 0)),
            pl.BlockSpec((tile_r, LANE), lambda i: (i, 0)),
        ],
        out_specs=pl.BlockSpec((1, 2, 8, LANE), lambda i: (i, 0, 0, 0)),
        compiler_params=pltpu.CompilerParams(
            dimension_semantics=("parallel",),
            vmem_limit_bytes=32 * 1024 * 1024,
        ),
    )(x2, t2)

    # Tiny final cross-lane reduction + dice ratio in the wrapper.
    sums = jnp.sum(partials, axis=(0, 2, 3))  # (2,)
    intersection = sums[0]
    denom = sums[1] + jnp.float32(smooth)
    dice = (2.0 * intersection + jnp.float32(smooth)) / denom
    return 1.0 - dice


def dice_loss_ref(inputs, targets, smooth=0.001):
    s = jax.nn.sigmoid(inputs.astype(jnp.float32)).reshape(-1)
    t = targets.astype(jnp.float32).reshape(-1)
    inter = jnp.sum(s * t)
    dice = (2.0 * inter + smooth) / (jnp.sum(s) + jnp.sum(t) + smooth)
    return 1.0 - dice


if __name__ == "__main__":
    key = jax.random.PRNGKey(0)
    k1, k2 = jax.random.split(key)

    # NCHW-shaped logits + binary targets (n % 128 == 0 -> zero-copy path).
    x = jax.random.normal(k1, (2, 4, 16, 16), dtype=jnp.float32)
    tgt = (jax.random.uniform(k2, (2, 4, 16, 16)) > 0.5).astype(jnp.float32)
    loss = dice_loss(x, tgt)
    jax.block_until_ready(loss)
    ref = dice_loss_ref(x, tgt)
    assert jnp.allclose(loss, ref, atol=1e-5, rtol=1e-5), (loss, ref)

    # Ragged size: exercises the minimal-pad path + in-kernel row masking of
    # the partial last block.
    x3 = jax.random.normal(k1, (3, 5, 13, 17), dtype=jnp.float32)
    t3 = (jax.random.uniform(k2, (3, 5, 13, 17)) > 0.5).astype(jnp.float32)
    loss3 = dice_loss(x3, t3)
    jax.block_until_ready(loss3)
    ref3 = dice_loss_ref(x3, t3)
    assert jnp.allclose(loss3, ref3, atol=1e-5, rtol=1e-5), (loss3, ref3)

    # Multiple of 128 but not of the tile: partial-block masking, zero-copy.
    x4 = jax.random.normal(k1, (1, 1, 20, 128), dtype=jnp.float32)
    t4 = (jax.random.uniform(k2, (1, 1, 20, 128)) > 0.5).astype(jnp.float32)
    loss4 = dice_loss(x4, t4)
    jax.block_until_ready(loss4)
    ref4 = dice_loss_ref(x4, t4)
    assert jnp.allclose(loss4, ref4, atol=1e-5, rtol=1e-5), (loss4, ref4)

    print("KERNEL_OK")
</pallas_src>

<mosaic_0001>
module attributes {stable_mosaic.version = 11 : i64} {
  func.func @_dice_kernel(%arg0: i32, %arg1: memref<16x128xf32, #tpu.memory_space<vmem>>, %arg2: memref<16x128xf32, #tpu.memory_space<vmem>>, %arg3: memref<1x2x8x128xf32, #tpu.memory_space<vmem>>) attributes {dimension_semantics = [#tpu.dimension_semantics<parallel>], iteration_bounds = array<i64: 1>, scalar_prefetch = 0 : i64, scratch_operands = 0 : i64, tpu.core_type = #tpu.core_type<tc>, window_params = [{transform_indices = @transform_0, window_bounds = array<i64: 16, 128>}, {transform_indices = @transform_1, window_bounds = array<i64: 16, 128>}, {transform_indices = @transform_2, window_bounds = array<i64: 1, 2, 8, 128>}]} {
    %cst = arith.constant 0.000000e+00 : f32
    %0 = vector.broadcast %cst : f32 to vector<8x128xf32>
    %c0_i32 = arith.constant 0 : i32
    %c8_i32 = arith.constant 8 : i32
    %1 = arith.muli %c0_i32, %c8_i32 : i32
    %2 = tpu.assume_multiple %1, 8 : i32
    %3 = arith.index_cast %2 : i32 to index
    %c0 = arith.constant 0 : index
    %4 = vector.load %arg1[%3, %c0] : memref<16x128xf32, #tpu.memory_space<vmem>>, vector<8x128xf32>
    %5 = arith.index_cast %2 : i32 to index
    %c0_0 = arith.constant 0 : index
    %6 = vector.load %arg2[%5, %c0_0] : memref<16x128xf32, #tpu.memory_space<vmem>>, vector<8x128xf32>
    %7 = arith.negf %4 : vector<8x128xf32>
    %8 = math.exp %7 : vector<8x128xf32>
    %cst_1 = arith.constant 1.000000e+00 : f32
    %9 = vector.broadcast %cst_1 : f32 to vector<8x128xf32>
    %10 = arith.addf %9, %8 : vector<8x128xf32>
    %11 = arith.divf %9, %10 : vector<8x128xf32>
    %12 = arith.mulf %11, %6 : vector<8x128xf32>
    %13 = arith.addf %0, %12 : vector<8x128xf32>
    %14 = arith.addf %11, %6 : vector<8x128xf32>
    %15 = arith.addf %0, %14 : vector<8x128xf32>
    %c1_i32 = arith.constant 1 : i32
    %c8_i32_2 = arith.constant 8 : i32
    %16 = arith.muli %c1_i32, %c8_i32_2 : i32
    %17 = tpu.assume_multiple %16, 8 : i32
    %18 = arith.index_cast %17 : i32 to index
    %c0_3 = arith.constant 0 : index
    %19 = vector.load %arg1[%18, %c0_3] : memref<16x128xf32, #tpu.memory_space<vmem>>, vector<8x128xf32>
    %20 = arith.index_cast %17 : i32 to index
    %c0_4 = arith.constant 0 : index
    %21 = vector.load %arg2[%20, %c0_4] : memref<16x128xf32, #tpu.memory_space<vmem>>, vector<8x128xf32>
    %22 = arith.negf %19 : vector<8x128xf32>
    %23 = math.exp %22 : vector<8x128xf32>
    %cst_5 = arith.constant 1.000000e+00 : f32
    %24 = vector.broadcast %cst_5 : f32 to vector<8x128xf32>
    %25 = arith.addf %24, %23 : vector<8x128xf32>
    %26 = arith.divf %24, %25 : vector<8x128xf32>
    %27 = arith.mulf %26, %21 : vector<8x128xf32>
    %28 = arith.addf %13, %27 : vector<8x128xf32>
    %29 = arith.addf %26, %21 : vector<8x128xf32>
    %30 = arith.addf %15, %29 : vector<8x128xf32>
    %c2_i32 = arith.constant 2 : i32
    %31 = vector.shape_cast %28 : vector<8x128xf32> to vector<1x8x128xf32>
    %cst_6 = arith.constant dense<0.000000e+00> : vector<8x128xf32>
    %32 = vector.multi_reduction <add>, %31, %cst_6 [0] : vector<1x8x128xf32> to vector<8x128xf32>
    %c0_7 = arith.constant 0 : index
    %c0_8 = arith.constant 0 : index
    %c0_9 = arith.constant 0 : index
    %c0_10 = arith.constant 0 : index
    %33 = vector.load %arg3[%c0_7, %c0_8, %c0_9, %c0_10] : memref<1x2x8x128xf32, #tpu.memory_space<vmem>>, vector<1x1x8x128xf32>
    %34 = vector.shape_cast %33 : vector<1x1x8x128xf32> to vector<8x128xf32>
    %35 = vector.shape_cast %32 : vector<8x128xf32> to vector<1x1x8x128xf32>
    tpu.vector_store %arg3[%c0_7, %c0_8, %c0_9, %c0_10], %35 {strides = array<i32>} : memref<1x2x8x128xf32, #tpu.memory_space<vmem>>, vector<1x1x8x128xf32>,
    %36 = vector.shape_cast %30 : vector<8x128xf32> to vector<1x8x128xf32>
    %cst_11 = arith.constant dense<0.000000e+00> : vector<8x128xf32>
    %37 = vector.multi_reduction <add>, %36, %cst_11 [0] : vector<1x8x128xf32> to vector<8x128xf32>
    %c0_12 = arith.constant 0 : index
    %c1 = arith.constant 1 : index
    %c0_13 = arith.constant 0 : index
    %c0_14 = arith.constant 0 : index
    %38 = vector.load %arg3[%c0_12, %c1, %c0_13, %c0_14] : memref<1x2x8x128xf32, #tpu.memory_space<vmem>>, vector<1x1x8x128xf32>
    %39 = vector.shape_cast %38 : vector<1x1x8x128xf32> to vector<8x128xf32>
    %40 = vector.shape_cast %37 : vector<8x128xf32> to vector<1x1x8x128xf32>
    tpu.vector_store %arg3[%c0_12, %c1, %c0_13, %c0_14], %40 {strides = array<i32>} : memref<1x2x8x128xf32, #tpu.memory_space<vmem>>, vector<1x1x8x128xf32>,
    return
  }
  func.func @transform_0(%arg0: i32) -> (i32, i32) {
    %c0_i32 = arith.constant 0 : i32
    %c0_i32_0 = arith.constant 0 : i32
    return %arg0, %c0_i32 : i32, i32
  }
  func.func @transform_1(%arg0: i32) -> (i32, i32) {
    %c0_i32 = arith.constant 0 : i32
    %c0_i32_0 = arith.constant 0 : i32
    return %arg0, %c0_i32 : i32, i32
  }
  func.func @transform_2(%arg0: i32) -> (i32, i32, i32, i32) {
    %c0_i32 = arith.constant 0 : i32
    %c0_i32_0 = arith.constant 0 : i32
    %c0_i32_1 = arith.constant 0 : i32
    %c0_i32_2 = arith.constant 0 : i32
    return %arg0, %c0_i32, %c0_i32_0, %c0_i32_1 : i32, i32, i32, i32
  }
}

</mosaic_0001>

<bundles_post_ra>
// kernel: tpu_custom_call.1
= control target key start
LH: loop header
LB: loop body
LE: loop exit
PB: predicated region body
PF: predicated region fallthrough
CT: control target
= control target key end

     0   :  { %7 = vsyncpa [#allocation3], 0  ;;  %s252_s0 = inlined_call_operand.hbm [shape: f32[16,128], index: 0, kind: input, shape index: {}]   ;;  %s253_s1 = inlined_call_operand.hbm [shape: f32[16,128], index: 1, kind: input, shape index: {}]   ;;  %s254_s2 = inlined_call_operand.hbm [shape: f32[1,2,8,128], index: 2, kind: output, shape index: {}]  }
   0x1   :  { %8 = vsyncpa [#allocation6], 0 }
   0x2   :  { %9 = vsyncpa [#allocation4], 0  ;;  %s14_s11 = sshll.u32 %s252_s0, 4  ;;  %s214_s12 = smov [#allocation2]   ;;  %s15_s11 = int_to_ptr.hbm [resolvable:$true] %s14_s11 }
   0x3   :  { %s16_s13 = sshll.u32 %s214_s12, 4  ;;  %s27_s16 = sshll.u32 %s253_s1, 4  ;;  %s17_s13 = int_to_ptr.vmem [resolvable:$true] %s16_s13  ;;  %s28_s16 = int_to_ptr.hbm [resolvable:$true] %s27_s16 }
   0x4   :  { %s215_s17 = smov 128   ;;  %s216_s18 = smov 8  }
   0x5   :  { %22 = dma.hbm_to_vmem [thread:$0]  %s15_s11, 256, %s17_s13, [#allocation3], %s215_s17, %s215_s17, %s216_s18  }
   0x6   :  { %s217_s19 = smov [#allocation5]  }
   0x7   :  { %s29_s20 = sshll.u32 %s217_s19, 4  ;;  %s30_s20 = int_to_ptr.vmem [resolvable:$true] %s29_s20 }
   0x8   :  { %35 = dma.hbm_to_vmem [thread:$0]  %s28_s16, 256, %s30_s20, [#allocation6], %s215_s17, %s215_s17, %s216_s18  }
   0x9   :  { %208 = dma.done.wait [#allocation3], 256  }
   0xa   :  { %209 = vsyncadd [#allocation3], 4294967040 }
   0xb   :  { %210 = dma.done.wait [#allocation6], 256  }
   0xc   :  { %211 = vsyncadd [#allocation6], 4294967040  ;;  %v44_v0 = vld [vmem:[#allocation2] sm:$0xff]  ;;  %v70_v1 = vld [vmem:[#allocation2 + $0x8] sm:$0xff]  ;;  %s218_s0 = smov [#allocation7]   ;;  %s107_s23 = sshll.u32 %s254_s2, 4  ;;  %s108_s23 = int_to_ptr.hbm [resolvable:$true] %s107_s23 }
   0xd   :  { %v121_v2 = vmul.f32 -1.442695, %v44_v0  ;;  %v122_v3 = vmul.f32 -1.442695, %v70_v1  ;;  %v45_v23 = vld [vmem:[#allocation5] sm:$0xff]  ;;  %v72_v26 = vld [vmem:[#allocation5 + $0x8] sm:$0xff] }
   0xe   :  { %s105_s1 = sshll.u32 %s218_s0, 4  ;;  %s106_s1 = int_to_ptr.vmem [resolvable:$true] %s105_s1 }
   0xf   :  { %128 = vpow2.f32 %v121_v2 }
  0x10   :  { %130 = vpow2.f32 %v122_v3 }
  0x15   :  { %v129_v4 = vpop.eup %128 }
  0x16   :  { %v131_v5 = vpop.eup %130  ;;  %v49_v6 = vadd.f32 1.0, %v129_v4 }
  0x17   :  { %v76_v7 = vadd.f32 1.0, %v131_v5 }
  0x18   :  { %132 = vrcp.f32 %v49_v6  ;;  %vm55_vm0 = vweird.f32 %v49_v6  ;;  %v61_v11 = vand.u32 2147483648, %v49_v6  ;;  %v59_v14 = vand.u32 2147483647, %v49_v6 }
  0x19   :  { %134 = vrcp.f32 %v76_v7  ;;  %v88_v15 = vand.u32 2147483648, %v76_v7  ;;  %vm82_vm2 = vweird.f32 %v76_v7  ;;  %v86_v17 = vand.u32 2147483647, %v76_v7 }
  0x1a   :  { %v62_v19 = vor.u32 1.1754944e-38, %v61_v11  ;;  %vm60_vm5 = vcmp.eq.f32.partialorder %v59_v14, 8.507059e+37 }
  0x1b   :  { %v89_v22 = vor.u32 1.1754944e-38, %v88_v15  ;;  %vm87_vm7 = vcmp.eq.f32.partialorder %v86_v17, 8.507059e+37 }
  0x1e   :  { %v133_v8 = vpop.eup %132 }
  0x1f   :  { %v135_v9 = vpop.eup %134  ;;  %v51_v10 = vmul.f32 %v133_v8, %v49_v6  ;;  %vm56_vm1 = vweird.f32 %v133_v8 }
  0x20   :  { %v78_v12 = vmul.f32 %v135_v9, %v76_v7  ;;  %vm83_vm3 = vweird.f32 %v135_v9  ;;  %vm57_vm4 = vmor %vm55_vm0, %vm56_vm1 }
  0x21   :  { %v52_v13 = vsub.f32 1.0, %v51_v10  ;;  %vm84_vm6 = vmor %vm82_vm2, %vm83_vm3 }
  0x22   :  { %v79_v16 = vsub.f32 1.0, %v78_v12 }
  0x23   :  { %v53_v18 = vmul.f32 %v133_v8, %v52_v13 }
  0x24   :  { %v80_v20 = vmul.f32 %v135_v9, %v79_v16 }
  0x25   :  { %v54_v21 = vadd.f32 %v133_v8, %v53_v18 }
  0x26   :  { %v81_v24 = vadd.f32 %v135_v9, %v80_v20 }
  0x27   :  { %v58_v25 = vsel %vm57_vm4, %v133_v8, %v54_v21 }
  0x28   :  { %v63_v27 = vsel %vm60_vm5, %v62_v19, %v58_v25  ;;  %v85_v28 = vsel %vm84_vm6, %v135_v9, %v81_v24 }
  0x29   :  { %v65_v29 = vmul.f32 %v63_v27, %v45_v23  ;;  %v90_v30 = vsel %vm87_vm7, %v89_v22, %v85_v28  ;;  %v67_v31 = vadd.f32 %v63_v27, %v45_v23 }
  0x2a   :  { %v92_v32 = vmul.f32 %v90_v30, %v72_v26  ;;  %v94_v33 = vadd.f32 %v90_v30, %v72_v26 }
  0x2c   :  { %v93_v34 = vadd.f32 %v92_v32, %v65_v29  ;;  %v95_v35 = vadd.f32 %v94_v33, %v67_v31 }
  0x2e   :  { %97 = vst [vmem:[#allocation7] sm:$0xff] %v93_v34 }
  0x2f   :  { %100 = vst [vmem:[#allocation7 + $0x8] sm:$0xff] %v95_v35 }
  0x30   :  { %113 = dma.vmem_to_hbm [thread:$0]  %s106_s1, 256, %s108_s23, [#allocation4], %s215_s17, %s215_s17, %s216_s18  }
  0x31   :  { %212 = dma.done.wait [#allocation4], 256  }
  0x32   :  { %213 = vsyncadd [#allocation4], 4294967040 }
  0x33   :  { %118 = vsyncpa [#allocation3], 1 }
  0x34   :  { %119 = vsyncpa [#allocation6], 1 }
  0x35   :  { %120 = vsyncpa [#allocation4], 1 }

</bundles_post_ra>
